<compile_context>
chip_gen: v7x
topology: tpu7x:2x2x1
jax: 0.10.0
libtpu: 0.0.40
codegen_flags: <defaults>
</compile_context>

<pallas_src>
import numpy as np
import jax
import jax.numpy as jnp
from jax import lax
from jax.experimental import pallas as pl
from jax.experimental.pallas import tpu as pltpu


# ----------------------------------------------------------------------------
# Tiling helpers
# ----------------------------------------------------------------------------
def _round_up(x, m):
    return ((x + m - 1) // m) * m


def _tile_and_pad(dim, pref, align):
    """Pick a tile that is a multiple of `align` (>= align, ~<= pref) and the
    padded extent (smallest multiple of the tile >= dim)."""
    tile = min(_round_up(pref, align), _round_up(dim, align))
    tile = max(tile, align)
    return tile, _round_up(dim, tile)


def _choose_tile(full, pref, align):
    """Largest tile <= pref that divides `full` and is a multiple of `align`;
    falls back to the full dimension (always a legal block size)."""
    if full <= pref:
        return full
    t = (pref // align) * align
    while t >= align:
        if full % t == 0:
            return t
        t -= align
    return full


# ----------------------------------------------------------------------------
# Kernel 1: y = x @ W + xu @ vt, tiled over (M, N, K); xu = x @ (u*s) precomputed.
# ----------------------------------------------------------------------------
def _svd_lora_matmul_kernel(x_ref, w_ref, xu_ref, vt_ref, o_ref, acc_ref):
    kk = pl.program_id(2)

    @pl.when(kk == 0)
    def _():
        acc_ref[...] = jnp.zeros_like(acc_ref)

    # Main term: accumulate x @ W over the K tiles (bf16 inputs, f32 accumulate).
    acc_ref[...] += jnp.dot(x_ref[...], w_ref[...],
                            preferred_element_type=jnp.float32)

    @pl.when(kk == pl.num_programs(2) - 1)
    def _():
        # Rank-r correction, once per (i, j) output tile; r is tiny so this is cheap.
        lora = jnp.dot(xu_ref[...], vt_ref[...],
                       preferred_element_type=jnp.float32)
        o_ref[...] = (acc_ref[...] + lora).astype(o_ref.dtype)


def svd_lora_matmul(x2d, orig_weight, lora_u, lora_s, lora_vt, *,
                    tm=512, tn=512, tk=512, matmul_dtype=jnp.bfloat16):
    M, K = x2d.shape
    Kw, N = orig_weight.shape
    assert K == Kw, "in_features mismatch"
    r = lora_u.shape[1]
    out_dtype = x2d.dtype

    # Rank-r projection in f32 outside the kernel (singular values folded in f32 for
    # precision; M*K*r FLOPs is negligible next to M*K*N).
    u_scaled = lora_u.astype(jnp.float32) * lora_s.astype(jnp.float32)[None, :]
    xu = jnp.dot(x2d.astype(jnp.float32), u_scaled)        # (M, r) f32
    vt = lora_vt.astype(jnp.float32)                        # (r, N) f32

    # Stream the big operands in bf16 (f32 accumulation in the kernel).
    x_c = x2d.astype(matmul_dtype)
    w_c = orig_weight.astype(matmul_dtype)

    # 128-aligned tiles; zero-pad to tile multiples (zeros are exact for the matmul),
    # slice the output back at the end.
    tm, Mp = _tile_and_pad(M, tm, 128)
    tn, Np = _tile_and_pad(N, tn, 128)
    tk, Kp = _tile_and_pad(K, tk, 128)
    if (Mp, Kp) != (M, K):
        x_c = jnp.pad(x_c, ((0, Mp - M), (0, Kp - K)))
    if (Kp, Np) != (K, N):
        w_c = jnp.pad(w_c, ((0, Kp - K), (0, Np - N)))
    if Mp != M:
        xu = jnp.pad(xu, ((0, Mp - M), (0, 0)))
    if Np != N:
        vt = jnp.pad(vt, ((0, 0), (0, Np - N)))

    grid = (Mp // tm, Np // tn, Kp // tk)

    xd = jnp.dtype(matmul_dtype).itemsize
    od = jnp.dtype(out_dtype).itemsize
    # Double-buffered inputs/output + f32 accumulator; give the compiler headroom
    # (>= 32 MiB to beat v5e's 16 MiB default, capped at v7x's 64 MiB physical VMEM).
    est_vmem = (2 * (tm * tk * xd + tk * tn * xd + tm * r * 4 + r * tn * 4)
                + 2 * tm * tn * od + tm * tn * 4)
    vmem_limit = int(min(64 * 1024 * 1024, max(32 * 1024 * 1024, 2 * est_vmem)))

    cost = pl.CostEstimate(
        flops=2 * Mp * Np * Kp + 2 * Mp * r * Np,
        transcendentals=0,
        bytes_accessed=(Mp * Kp * xd * (Np // tn)      # x re-streamed per column tile
                        + Kp * Np * xd * (Mp // tm)    # W re-streamed per row tile
                        + Mp * Np * od
                        + Mp * r * 4 + r * Np * 4))

    out = pl.pallas_call(
        _svd_lora_matmul_kernel,
        out_shape=jax.ShapeDtypeStruct((Mp, Np), out_dtype),
        grid_spec=pltpu.PrefetchScalarGridSpec(
            num_scalar_prefetch=0,
            grid=grid,
            in_specs=[
                pl.BlockSpec((tm, tk), lambda i, j, k: (i, k)),   # x (bf16)
                pl.BlockSpec((tk, tn), lambda i, j, k: (k, j)),   # orig_weight (bf16)
                pl.BlockSpec((tm, r), lambda i, j, k: (i, 0)),    # xu = x @ (u*s), f32
                pl.BlockSpec((r, tn), lambda i, j, k: (0, j)),    # vt, f32
            ],
            out_specs=pl.BlockSpec((tm, tn), lambda i, j, k: (i, j)),
            scratch_shapes=[pltpu.VMEM((tm, tn), jnp.float32)],   # f32 accumulator
        ),
        # i and j are independent (xu precomputed -> no cross-j scratch dependence);
        # k is the reduction axis.
        compiler_params=pltpu.CompilerParams(
            dimension_semantics=("parallel", "parallel", "arbitrary"),
            vmem_limit_bytes=vmem_limit),
        cost_estimate=cost,
    )(x_c, w_c, xu, vt)

    if (Mp, Np) != (M, N):
        out = out[:M, :N]
    return out


# ----------------------------------------------------------------------------
# Kernel 2: ||Gram(A) - I||_F^2 using only the upper-triangular tile pairs.
# Grid = (n_pairs, m_tiles); (ki, kj) per pair come from scalar-prefetched lists.
# Off-diagonal Gram tiles are counted twice (symmetry); the identity mask is only
# built on diagonal (ki == kj) tiles.  Per-pair partial sums are emitted so the
# pair axis can be megacore-parallel; final sum + sqrt happen in XLA.
# ----------------------------------------------------------------------------
def _make_gram_kernel(contract_axis):
    dnums = (((contract_axis,), (contract_axis,)), ((), ()))

    def kernel(ki_ref, kj_ref, ai_ref, aj_ref, o_ref, g_acc):
        p = pl.program_id(0)
        mi = pl.program_id(1)

        @pl.when(mi == 0)
        def _():
            g_acc[...] = jnp.zeros_like(g_acc)

        # NOTE: contracting the un-transposed operands; Mosaic lowers this as a
        # transposed-LHS matmul on the MXU (no per-tile XLU transpose expected).
        g_acc[...] += lax.dot_general(
            ai_ref[...], aj_ref[...], dnums, preferred_element_type=jnp.float32)

        is_last = mi == pl.num_programs(1) - 1
        is_diag = ki_ref[p] == kj_ref[p]

        @pl.when(is_last & is_diag)
        def _():
            g = g_acc[...]
            t = g.shape[0]
            ii = lax.broadcasted_iota(jnp.int32, (t, t), 0)
            jj = lax.broadcasted_iota(jnp.int32, (t, t), 1)
            d = g - jnp.where(ii == jj, 1.0, 0.0).astype(jnp.float32)
            o_ref[...] = jnp.full(o_ref.shape, jnp.sum(d * d), dtype=o_ref.dtype)

        @pl.when(is_last & jnp.logical_not(is_diag))
        def _():
            g = g_acc[...]
            o_ref[...] = jnp.full(o_ref.shape, 2.0 * jnp.sum(g * g), dtype=o_ref.dtype)

    return kernel


def gram_frobenius_norm_minus_eye(a, contract_axis, *, tkk=512, tmg=512):
    """contract_axis=0, A:(m,k) -> ||A^T A - I||_F
       contract_axis=1, A:(k,m) -> ||A A^T - I||_F   (no transpose anywhere)."""
    if contract_axis == 0:
        m, k = a.shape
    else:
        k, m = a.shape

    # Divide-exactly tiles (fall back to the full dim); k is not zero-padded because
    # padded diagonal entries would interact with the identity subtraction.
    tkk = _choose_tile(k, tkk, 128)
    tmg = _choose_tile(m, tmg, 128)
    nkt = k // tkk
    nmt = m // tmg

    # Upper-triangular pair list (ki <= kj); off-diag tiles weighted by 2 in-kernel.
    pairs = [(i, j) for i in range(nkt) for j in range(i, nkt)]
    n_pairs = len(pairs)
    ki_arr = jnp.asarray([p[0] for p in pairs], dtype=jnp.int32)
    kj_arr = jnp.asarray([p[1] for p in pairs], dtype=jnp.int32)

    if contract_axis == 0:
        spec_i = pl.BlockSpec((tmg, tkk), lambda p, mi, ki, kj: (mi, ki[p]))
        spec_j = pl.BlockSpec((tmg, tkk), lambda p, mi, ki, kj: (mi, kj[p]))
    else:
        spec_i = pl.BlockSpec((tkk, tmg), lambda p, mi, ki, kj: (ki[p], mi))
        spec_j = pl.BlockSpec((tkk, tmg), lambda p, mi, ki, kj: (kj[p], mi))

    est_vmem = 4 * tmg * tkk * a.dtype.itemsize + tkk * tkk * 4 + 2 * 128 * 4
    vmem_limit = int(min(64 * 1024 * 1024, max(32 * 1024 * 1024, 2 * est_vmem)))

    partials = pl.pallas_call(
        _make_gram_kernel(contract_axis),
        out_shape=jax.ShapeDtypeStruct((n_pairs, 1, 128), jnp.float32),
        grid_spec=pltpu.PrefetchScalarGridSpec(
            num_scalar_prefetch=2,
            grid=(n_pairs, nmt),
            in_specs=[spec_i, spec_j],
            out_specs=pl.BlockSpec((1, 1, 128), lambda p, mi, ki, kj: (p, 0, 0)),
            scratch_shapes=[pltpu.VMEM((tkk, tkk), jnp.float32)],
        ),
        # Pairs are independent -> "parallel" (megacore-shardable on v7x);
        # mi is the contraction axis for the resident g_acc -> "arbitrary".
        compiler_params=pltpu.CompilerParams(
            dimension_semantics=("parallel", "arbitrary"),
            vmem_limit_bytes=vmem_limit),
    )(ki_arr, kj_arr, a, a)

    ssq = jnp.sum(partials[:, 0, 0])
    return jnp.sqrt(jnp.maximum(ssq, 0.0))


# ----------------------------------------------------------------------------
# Parameter construction (mirrors SVDLoRASequential.__init__ + update_adapter(0))
# ----------------------------------------------------------------------------
def build_svd_lora_params(key, in_features, out_features, rank, n_adapters):
    # TODO(synk): torch.linalg.svd + adapter bookkeeping is host-side module setup,
    # done here with numpy/XLA (not a Pallas kernel).
    w = jax.random.normal(key, (out_features, in_features), dtype=jnp.float32)
    wt = np.asarray(w).T  # (in, out)
    u, s, vt = np.linalg.svd(wt, full_matrices=False)  # u:(in,k) s:(k,) vt:(k,out)
    k = s.shape[0]

    loras_u, loras_s, loras_vt = [], [], []
    for i in range(n_adapters - 1, -1, -1):
        start = k - rank * (i + 1)
        end = k - rank * i  # == u.shape[1] when i == 0
        loras_u.append(jnp.asarray(u[:, start:end], dtype=jnp.float32))
        loras_s.append(jnp.asarray(s[start:end], dtype=jnp.float32))
        loras_vt.append(jnp.asarray(vt[start:end, :], dtype=jnp.float32))

    base_u = jnp.asarray(u[:, : k - rank * n_adapters], dtype=jnp.float32)
    base_s = jnp.asarray(s[: k - rank * n_adapters], dtype=jnp.float32)
    base_vt = jnp.asarray(vt[: k - rank * n_adapters, :], dtype=jnp.float32)

    full_weight = base_u @ jnp.diag(base_s) @ base_vt + sum(
        lu @ jnp.diag(ls) @ lvt for lu, ls, lvt in zip(loras_u, loras_s, loras_vt)
    )

    # update_adapter(0): orig_weight = full_weight - adapter-0 contribution
    cur_idx = 0
    orig_weight = full_weight - (
        loras_u[cur_idx] @ jnp.diag(loras_s[cur_idx]) @ loras_vt[cur_idx]
    )

    return {
        "u": base_u, "s": base_s, "vt": base_vt,
        "loras_u": loras_u, "loras_s": loras_s, "loras_vt": loras_vt,
        "orig_weight": orig_weight, "cur_idx": cur_idx, "k": k,
    }


# ----------------------------------------------------------------------------
# Forward
# ----------------------------------------------------------------------------
def svd_lora_forward(params, x, enable_extra_loss=True, *,
                     mm_tiles=(512, 512, 512), gram_tiles=(512, 512),
                     matmul_dtype=jnp.bfloat16):
    B, S, K = x.shape
    x2d = x.reshape(B * S, K)
    ci = params["cur_idx"]

    out2d = svd_lora_matmul(
        x2d, params["orig_weight"],
        params["loras_u"][ci], params["loras_s"][ci], params["loras_vt"][ci],
        tm=mm_tiles[0], tn=mm_tiles[1], tk=mm_tiles[2],
        matmul_dtype=matmul_dtype)
    out = out2d.reshape(B, S, -1)

    extra_loss = jnp.float32(0.0)
    if enable_extra_loss:
        # NOTE: the concat is one XLA copy; avoiding it would need scalar-prefetch
        # index maps over the ragged factor list.
        u_cat = jnp.concatenate([params["u"]] + list(params["loras_u"]), axis=1)     # (in, k)
        vt_cat = jnp.concatenate([params["vt"]] + list(params["loras_vt"]), axis=0)  # (k, out)
        u_norm = gram_frobenius_norm_minus_eye(
            u_cat, contract_axis=0, tkk=gram_tiles[0], tmg=gram_tiles[1])
        vt_norm = gram_frobenius_norm_minus_eye(
            vt_cat, contract_axis=1, tkk=gram_tiles[0], tmg=gram_tiles[1])
        extra_loss = u_norm + vt_norm

    return out, extra_loss


# ----------------------------------------------------------------------------
# Main
# ----------------------------------------------------------------------------
if __name__ == "__main__":
    in_features = 256
    out_features = 256
    rank = 4
    n_adapters = 2
    batch, seq = 2, 128          # M = 256 rows

    key = jax.random.PRNGKey(0)
    k_w, k_x, k_x2 = jax.random.split(key, 3)

    params = build_svd_lora_params(k_w, in_features, out_features, rank, n_adapters)
    x = jax.random.normal(k_x, (batch, seq, in_features), dtype=jnp.float32)

    # Plain-JAX reference.
    ci = params["cur_idx"]
    lora_w = (params["loras_u"][ci] * params["loras_s"][ci][None, :]) @ params["loras_vt"][ci]
    w_eff = params["orig_weight"] + lora_w

    def ref_forward(xr):
        return (xr.reshape(-1, in_features) @ w_eff).reshape(
            xr.shape[0], xr.shape[1], out_features)

    u_cat = jnp.concatenate([params["u"]] + list(params["loras_u"]), axis=1)
    vt_cat = jnp.concatenate([params["vt"]] + list(params["loras_vt"]), axis=0)
    eye = jnp.eye(params["k"], dtype=jnp.float32)
    ref_extra = (jnp.sqrt(jnp.sum((u_cat.T @ u_cat - eye) ** 2))
                 + jnp.sqrt(jnp.sum((vt_cat @ vt_cat.T - eye) ** 2)))

    # 1) Small tiles: exercises a (2,2,2) matmul grid and the symmetric-pair
    #    Gram grid (3 pairs x 2 contraction steps).
    out, extra_loss = svd_lora_forward(
        params, x, enable_extra_loss=True,
        mm_tiles=(128, 128, 128), gram_tiles=(128, 128))
    out = jax.block_until_ready(out)
    extra_loss = jax.block_until_ready(extra_loss)
    ref = ref_forward(x)

    assert out.shape == (batch, seq, out_features)
    assert bool(jnp.isfinite(extra_loss))
    rel = jnp.linalg.norm(out - ref) / jnp.linalg.norm(ref)
    assert bool(rel < 2e-2), f"matmul kernel mismatch (rel_err={rel})"
    assert bool(jnp.abs(extra_loss - ref_extra) < 1e-2), "extra-loss kernel mismatch"

    # 2) Default (large) tiles: no padding at these dims, single-tile grid.
    out2, extra2 = svd_lora_forward(params, x, enable_extra_loss=True)
    out2 = jax.block_until_ready(out2)
    rel2 = jnp.linalg.norm(out2 - ref) / jnp.linalg.norm(ref)
    assert bool(rel2 < 2e-2), f"default-tile mismatch (rel_err={rel2})"
    assert bool(jnp.abs(extra2 - ref_extra) < 1e-2), "default-tile extra-loss mismatch"

    # 3) Non-tile-multiple M: exercises the zero-padding path (M=200 -> 256).
    x_odd = jax.random.normal(k_x2, (batch, 100, in_features), dtype=jnp.float32)
    out3, _ = svd_lora_forward(params, x_odd, enable_extra_loss=False,
                               mm_tiles=(128, 128, 128))
    out3 = jax.block_until_ready(out3)
    ref3 = ref_forward(x_odd)
    rel3 = jnp.linalg.norm(out3 - ref3) / jnp.linalg.norm(ref3)
    assert bool(rel3 < 2e-2), f"padded-M mismatch (rel_err={rel3})"

    print("KERNEL_OK")
</pallas_src>

<mosaic_0001>
module attributes {stable_mosaic.version = 11 : i64} {
  func.func @_svd_lora_matmul_kernel(%arg0: i32, %arg1: i32, %arg2: i32, %arg3: memref<128x128xbf16, #tpu.memory_space<vmem>>, %arg4: memref<128x128xbf16, #tpu.memory_space<vmem>>, %arg5: memref<128x4xf32, #tpu.memory_space<vmem>>, %arg6: memref<4x128xf32, #tpu.memory_space<vmem>>, %arg7: memref<128x128xf32, #tpu.memory_space<vmem>>, %arg8: memref<128x128xf32, #tpu.memory_space<vmem>>) attributes {dimension_semantics = [#tpu.dimension_semantics<parallel>, #tpu.dimension_semantics<parallel>, #tpu.dimension_semantics<arbitrary>], iteration_bounds = array<i64: 2, 2, 2>, scalar_prefetch = 0 : i64, scratch_operands = 1 : i64, tpu.core_type = #tpu.core_type<tc>, window_params = [{transform_indices = @transform_0, window_bounds = array<i64: 128, 128>}, {transform_indices = @transform_1, window_bounds = array<i64: 128, 128>}, {transform_indices = @transform_2, window_bounds = array<i64: 128, 4>}, {transform_indices = @transform_3, window_bounds = array<i64: 4, 128>}, {transform_indices = @transform_4, window_bounds = array<i64: 128, 128>}]} {
    %c0_i32 = arith.constant 0 : i32
    %0 = arith.cmpi eq, %arg2, %c0_i32 : i32
    %1 = arith.extui %0 : i1 to i32
    %c0_i32_0 = arith.constant 0 : i32
    %2 = arith.cmpi ne, %1, %c0_i32_0 : i32
    scf.if %2 {
      %cst_9 = arith.constant 0.000000e+00 : f32
      %12 = vector.broadcast %cst_9 : f32 to vector<128x128xf32>
      %c0_10 = arith.constant 0 : index
      %c0_11 = arith.constant 0 : index
      %13 = vector.load %arg8[%c0_10, %c0_11] : memref<128x128xf32, #tpu.memory_space<vmem>>, vector<128x128xf32>
      tpu.vector_store %arg8[%c0_10, %c0_11], %12 {strides = array<i32>} : memref<128x128xf32, #tpu.memory_space<vmem>>, vector<128x128xf32>,
    } else {
    }
    %c0 = arith.constant 0 : index
    %c0_1 = arith.constant 0 : index
    %3 = vector.load %arg8[%c0, %c0_1] : memref<128x128xf32, #tpu.memory_space<vmem>>, vector<128x128xf32>
    %c0_2 = arith.constant 0 : index
    %c0_3 = arith.constant 0 : index
    %4 = vector.load %arg3[%c0_2, %c0_3] : memref<128x128xbf16, #tpu.memory_space<vmem>>, vector<128x128xbf16>
    %c0_4 = arith.constant 0 : index
    %c0_5 = arith.constant 0 : index
    %5 = vector.load %arg4[%c0_4, %c0_5] : memref<128x128xbf16, #tpu.memory_space<vmem>>, vector<128x128xbf16>
    %cst = arith.constant dense<0.000000e+00> : vector<128x128xf32>
    %6 = tpu.matmul %4, %5, %cst {dimension_numbers = #tpu.dot_dimension_numbers<[1], [0], [0], [1], [0, 0, 1, 1], [], []>} : vector<128x128xbf16>, vector<128x128xbf16>, vector<128x128xf32> -> vector<128x128xf32>
    %7 = arith.addf %3, %6 : vector<128x128xf32>
    %c0_6 = arith.constant 0 : index
    %c0_7 = arith.constant 0 : index
    %8 = vector.load %arg8[%c0_6, %c0_7] : memref<128x128xf32, #tpu.memory_space<vmem>>, vector<128x128xf32>
    tpu.vector_store %arg8[%c0_6, %c0_7], %7 {strides = array<i32>} : memref<128x128xf32, #tpu.memory_space<vmem>>, vector<128x128xf32>,
    %c1_i32 = arith.constant 1 : i32
    %9 = arith.cmpi eq, %arg2, %c1_i32 : i32
    %10 = arith.extui %9 : i1 to i32
    %c0_i32_8 = arith.constant 0 : i32
    %11 = arith.cmpi ne, %10, %c0_i32_8 : i32
    scf.if %11 {
      %c0_9 = arith.constant 0 : index
      %c0_10 = arith.constant 0 : index
      %12 = vector.load %arg5[%c0_9, %c0_10] : memref<128x4xf32, #tpu.memory_space<vmem>>, vector<128x4xf32>
      %c0_11 = arith.constant 0 : index
      %c0_12 = arith.constant 0 : index
      %13 = vector.load %arg6[%c0_11, %c0_12] : memref<4x128xf32, #tpu.memory_space<vmem>>, vector<4x128xf32>
      %cst_13 = arith.constant dense<0.000000e+00> : vector<128x128xf32>
      %14 = tpu.matmul %12, %13, %cst_13 {dimension_numbers = #tpu.dot_dimension_numbers<[1], [0], [0], [1], [0, 0, 1, 1], [], []>} : vector<128x4xf32>, vector<4x128xf32>, vector<128x128xf32> -> vector<128x128xf32>
      %c0_14 = arith.constant 0 : index
      %c0_15 = arith.constant 0 : index
      %15 = vector.load %arg8[%c0_14, %c0_15] : memref<128x128xf32, #tpu.memory_space<vmem>>, vector<128x128xf32>
      %16 = arith.addf %15, %14 : vector<128x128xf32>
      %c0_16 = arith.constant 0 : index
      %c0_17 = arith.constant 0 : index
      %17 = vector.load %arg7[%c0_16, %c0_17] : memref<128x128xf32, #tpu.memory_space<vmem>>, vector<128x128xf32>
      tpu.vector_store %arg7[%c0_16, %c0_17], %16 {strides = array<i32>} : memref<128x128xf32, #tpu.memory_space<vmem>>, vector<128x128xf32>,
    } else {
    }
    return
  }
  func.func @transform_0(%arg0: i32, %arg1: i32, %arg2: i32) -> (i32, i32) {
    %c0_i32 = arith.constant 0 : i32
    return %arg0, %arg2 : i32, i32
  }
  func.func @transform_1(%arg0: i32, %arg1: i32, %arg2: i32) -> (i32, i32) {
    %c0_i32 = arith.constant 0 : i32
    return %arg2, %arg1 : i32, i32
  }
  func.func @transform_2(%arg0: i32, %arg1: i32, %arg2: i32) -> (i32, i32) {
    %c0_i32 = arith.constant 0 : i32
    %c0_i32_0 = arith.constant 0 : i32
    return %arg0, %c0_i32 : i32, i32
  }
  func.func @transform_3(%arg0: i32, %arg1: i32, %arg2: i32) -> (i32, i32) {
    %c0_i32 = arith.constant 0 : i32
    %c0_i32_0 = arith.constant 0 : i32
    return %c0_i32, %arg1 : i32, i32
  }
  func.func @transform_4(%arg0: i32, %arg1: i32, %arg2: i32) -> (i32, i32) {
    %c0_i32 = arith.constant 0 : i32
    return %arg0, %arg1 : i32, i32
  }
}

</mosaic_0001>

<bundles_post_ra>
// kernel: tpu_custom_call.1
= control target key start
LH: loop header
LB: loop body
LE: loop exit
PB: predicated region body
PF: predicated region fallthrough
CT: control target
= control target key end

     0   :  { %s2058_s0 = inlined_call_operand.vmem [shape: bf16[256,256], index: 0, kind: input, shape index: {}]   ;;  %s2059_s1 = inlined_call_operand.hbm [shape: bf16[256,256], index: 1, kind: input, shape index: {}]   ;;  %s2060_s2 = inlined_call_operand.vmem [shape: f32[256,4], index: 2, kind: input, shape index: {}]   ;;  %s2061_s3 = inlined_call_operand.vmem [shape: f32[4,256], index: 3, kind: input, shape index: {}]   ;;  %s2062_s4 = inlined_call_operand.hbm [shape: f32[256,256], index: 4, kind: output, shape index: {}]  }
   0x1   :  { %2072 = sst [smem:[#allocation18_spill]] %s2058_s0 }
   0x2   :  { %2073 = sst [smem:[#allocation19_spill]] %s2059_s1 }
   0x3   :  { %2074 = sst [smem:[#allocation20_spill]] %s2060_s2 }
   0x4   :  { %2075 = sst [smem:[#allocation21_spill]] %s2061_s3 }
   0x5   :  { %2076 = sst [smem:[#allocation22_spill]] %s2062_s4 }
   0x6   :  { %9 = vsyncpa [#allocation5], 0 }
   0x7   :  { %11 = vsyncpa [#allocation5 + $0x1], 0 }
   0x8   :  { %12 = vsyncpa [#allocation6], 0 }
   0x9   :  { %14 = vsyncpa [#allocation6 + $0x1], 0  ;;  %s1666_s15 = smov 0   ;;  %s1668_s16 = smov 0  }
   0xa   :  { %s1670_s17 = smov 0   ;;  %s1672_s18 = smov 0  }
   0xb   :  { %s1674_s19 = smov 0   ;;  %s1676_s20 = smov 0  }
   0xc   :  { %s1678_s21 = smov 0   ;;  %s1680_s22 = smov 0  }
   0xd   :  { %s1682_s23 = smov 0   ;;  %s1684_s24 = smov 0  }
   0xe   :  { %s1686_s25 = smov 0   ;;  %s1688_s26 = smov 0  }
   0xf   :  { %s1690_s27 = smov 0   ;;  %s1692_s28 = smov 0  }
  0x10   :  { %s1694_s29 = smov 0  }
  0x11 LB: > { %2077 = sst [smem:[#allocation10_spill]] %s1606_s23  ;;  %s32_s6 = sadd.s32 1, %s1618_s26  ;;  %s1630_s29 = sphi %s1694_s29, %s20_s29   ;;  %s1626_s28 = sphi %s1692_s28, %s2110_s28   ;;  %s1622_s27 = sphi %s1690_s27, %s2109_s27   ;;  %s1618_s26 = sphi %s1688_s26, %s2108_s26   ;;  %s1614_s25 = sphi %s1686_s25, %s2107_s25   ;;  %s1610_s24 = sphi %s1684_s24, %s2106_s24   ;;  %s1606_s23 = sphi %s1682_s23, %s2105_s23   ;;  %s1602_s22 = sphi %s1680_s22, %s2118_s22   ;;  %s1598_s21 = sphi %s1678_s21, %s2117_s21   ;;  %s1594_s20 = sphi %s1676_s20, %s2116_s20   ;;  %s1590_s19 = sphi %s1674_s19, %s2115_s19   ;;  %s1586_s18 = sphi %s1672_s18, %s2114_s18   ;;  %s1582_s17 = sphi %s1670_s17, %s2113_s17   ;;  %s1578_s16 = sphi %s1668_s16, %s2112_s16   ;;  %s1574_s15 = sphi %s1666_s15, %s2111_s15  }
  0x12   : > { %2078 = sst [smem:[#allocation11_spill]] %s1610_s24  ;;  %s35_s7 = sadd.s32 1, %s1622_s27 }
  0x13   : > { %2079 = sst [smem:[#allocation12_spill]] %s1618_s26  ;;  %p33_p0 = scmp.ge.s32.totalorder %s32_s6, 2 }
  0x14   : > { %2080 = sst [smem:[#allocation13_spill]] %s1622_s27  ;;  %s39_s8 = sadd.s32 1, %s1626_s28 }
  0x15   : > { %2081 = sst [smem:[#allocation14_spill]] %s1626_s28  ;;  %s48_s9 = sadd.s32 1, %s1602_s22 }
  0x16   : > { %p55_p1 = scmp.ne.s32.totalorder %s1602_s22, %s1598_s21  ;;  %s2120_s6 = smov (%p33_p0, %s32_s6), 0 }
  0x17   : > { %2082 = sst [smem:[#allocation15_spill]] %s2120_s6  ;;  %s2122_s7 = smov (!%p33_p0, %s35_s7), %s1622_s27 }
  0x18   : > { %s44_s10 = ssub.s32 %s1618_s26, %s2120_s6  ;;  %p56_p2 = scmp.eq.s32.totalorder %s1630_s29, 0 }
  0x19   : > { %p37_p3 = scmp.ge.s32.totalorder %s2122_s7, 2  ;;  %s76_s11 = sadd.s32 1, %s1594_s20 }
  0x1a   : > { %p1756_p4 = por %p56_p2, %p55_p1  ;;  %p83_p5 = scmp.ne.s32.totalorder %s1594_s20, %s1590_s19 }
  0x1b   : > { %s2124_s7 = smov (%p37_p3, %s2122_s7), 0  ;;  %s2126_s8 = smov (!%p37_p3, %s39_s8), %s1626_s28 }
  0x1c   : > { %2084 = sst [smem:[#allocation16_spill]] %s2124_s7  ;;  %s72_s13 = ssub.s32 %s1622_s27, %s2124_s7 }
  0x1d   : > { %p1767_p6 = por %p83_p5, %p56_p2  ;;  %p41_p7 = scmp.ge.s32.totalorder %s2126_s8, 2 }
  0x1e   : > { %s73_s5 = sor.u32 %s72_s13, %s44_s10  ;;  %p89_p9 = scmp.ne.s32.totalorder %s1590_s19, %s1586_s18 }
  0x1f   : > { %p74_p8 = scmp.eq.s32.totalorder %s73_s5, 0  ;;  %s2128_s8 = smov (%p41_p7, %s2126_s8), 0 }
  0x20   : > { %2086 = sst [smem:[#allocation17_spill]] %s2128_s8  ;;  %s43_s7 = ssub.s32 %s1626_s28, %s2128_s8 }
  0x21   : > { %s1776_s30 = scalar_select %p74_p8, %s1594_s20, %s76_s11  }
  0x22   : > { %s2087_s6 = sadd.s32 4294967295, %s1630_s29   ;;  %s45_s4 = sor.u32 %s44_s10, %s43_s7 }
  0x23   : > { %p90_p10 = scmp.eq.s32.totalorder %s2087_s6, 0  ;;  %s153_s23 = sor.u32 %s72_s13, %s43_s7 }
  0x24   : > { %p46_p11 = scmp.eq.s32.totalorder %s45_s4, 0  ;;  %p154_p13 = scmp.eq.s32.totalorder %s153_s23, 0 }
  0x25   : > { %p1782_p12 = por %p90_p10, %p89_p9  ;;  %s156_s5 = sadd.s32 1, %s1582_s17 }
  0x26   : > { %s1788_s2 = scalar_select %p46_p11, %s1602_s22, %s48_s9  }
  0x27   : > { %s1791_s18 = scalar_select %p154_p13, %s1582_s17, %s156_s5  }
  0x28   : > { %p166_p0 = scmp.ne.s32.totalorder %s1582_s17, %s1578_s16  ;;  %s2089_s24 = smov %s2087_s6 }
  0x29   : > { %p167_p1 = scmp.eq.s32.totalorder %s2089_s24, 7  ;;  %p172_p2 = scmp.ne.s32.totalorder %s1578_s16, %s1574_s15 }
  0x2a   : > { %s2090_s11 = sadd.s32 4294967294, %s1630_s29   ;;  %p1127_p8 = scmp.ge.s32.totalorder %s1630_s29, 8 }
  0x2b   : > { %p173_p3 = scmp.eq.s32.totalorder %s2090_s11, 7  ;;  %p1801_p5 = por %p167_p1, %p166_p0 }
  0x2c   : > { %189 = sbr.rel (%p1127_p8) target bundleno = 104 (0x68), region = 16 }
  0x2d   : > { %s2091_s6 = scalar_select %p1801_p5, 1, 0 }
  0x2e   : > { %p1805_p7 = por %p173_p3, %p172_p2 }
  0x30   : > { %s2092_s4 = scalar_select %p1805_p7, 1, 0 }
  0x33   : > { %192 = sbr.rel (!%p1756_p4) target bundleno = 71 (0x47), region = 20  ;;  %s194_s23 = sand.u32 (%p1756_p4), 1, %s1602_s22  }
  0x34   : > { %s1184_s24 = sshll.u32 (%p1756_p4), %s1626_s28, 5  ;;  %s1128_s7 = sshll.u32 (%p1756_p4), %s194_s23, 6 }
  0x35   : > { %s199_s9 = sadd.s32 (%p1756_p4), %s1618_s26, %s1184_s24  ;;  %s2093_s0 = sld [smem:[#allocation18_spill]] (%p1756_p4) }
  0x36   : > { %s1131_s10 = sshll.u32 (%p1756_p4), %s199_s9, 2  ;;  %s196_s12 = scalar_lea.vmem (%p1756_p4), [#allocation3], %s1128_s7 }
  0x3b   : > { %s1818_s11 = scalar_lea.vmem %s2093_s0, %s1131_s10 }
  0x3c   : > { %v217_v0 = vld [vmem:[%s1818_s11] sm:$0xf]  ;;  %v219_v1 = vld [vmem:[%s1818_s11 + $0x8] sm:$0xf]  ;;  %v221_v2 = vld [vmem:[%s1818_s11 + $0x10] sm:$0xf] }
  0x3d   : > { %218 = vst [vmem:[%s196_s12] sm:$0xf] %v217_v0  ;;  %220 = vst [vmem:[%s196_s12 + $0x4] sm:$0xf] %v219_v1  ;;  %v223_v3 = vld [vmem:[%s1818_s11 + $0x18] sm:$0xf] }
  0x3e   : > { %222 = vst [vmem:[%s196_s12 + $0x8] sm:$0xf] %v221_v2  ;;  %v225_v4 = vld [vmem:[%s1818_s11 + $0x20] sm:$0xf]  ;;  %v227_v5 = vld [vmem:[%s1818_s11 + $0x28] sm:$0xf] }
  0x3f   : > { %224 = vst [vmem:[%s196_s12 + $0xc] sm:$0xf] %v223_v3  ;;  %226 = vst [vmem:[%s196_s12 + $0x10] sm:$0xf] %v225_v4  ;;  %v229_v6 = vld [vmem:[%s1818_s11 + $0x30] sm:$0xf] }
  0x40   : > { %228 = vst [vmem:[%s196_s12 + $0x14] sm:$0xf] %v227_v5  ;;  %v231_v7 = vld [vmem:[%s1818_s11 + $0x38] sm:$0xf]  ;;  %v233_v8 = vld [vmem:[%s1818_s11 + $0x40] sm:$0xf] }
  0x41   : > { %230 = vst [vmem:[%s196_s12 + $0x18] sm:$0xf] %v229_v6  ;;  %232 = vst [vmem:[%s196_s12 + $0x1c] sm:$0xf] %v231_v7  ;;  %v235_v9 = vld [vmem:[%s1818_s11 + $0x48] sm:$0xf] }
  0x42   : > { %234 = vst [vmem:[%s196_s12 + $0x20] sm:$0xf] %v233_v8  ;;  %v237_v10 = vld [vmem:[%s1818_s11 + $0x50] sm:$0xf]  ;;  %v239_v11 = vld [vmem:[%s1818_s11 + $0x58] sm:$0xf] }
  0x43   : > { %236 = vst [vmem:[%s196_s12 + $0x24] sm:$0xf] %v235_v9  ;;  %238 = vst [vmem:[%s196_s12 + $0x28] sm:$0xf] %v237_v10  ;;  %v241_v12 = vld [vmem:[%s1818_s11 + $0x60] sm:$0xf] }
  0x44   : > { %240 = vst [vmem:[%s196_s12 + $0x2c] sm:$0xf] %v239_v11  ;;  %v243_v13 = vld [vmem:[%s1818_s11 + $0x68] sm:$0xf]  ;;  %v245_v14 = vld [vmem:[%s1818_s11 + $0x70] sm:$0xf] }
  0x45   : > { %242 = vst [vmem:[%s196_s12 + $0x30] sm:$0xf] %v241_v12  ;;  %244 = vst [vmem:[%s196_s12 + $0x34] sm:$0xf] %v243_v13  ;;  %v247_v15 = vld [vmem:[%s1818_s11 + $0x78] sm:$0xf] }
  0x46   : > { %246 = vst [vmem:[%s196_s12 + $0x38] sm:$0xf] %v245_v14  ;;  %248 = vst [vmem:[%s196_s12 + $0x3c] sm:$0xf] %v247_v15 }
  0x47 PF: > { %s304_s23 = sand.u32 1, %s1594_s20   ;;  %s1185_s24 = sshll.u32 %s1618_s26, 5 }
  0x48   : > { %s1132_s7 = sshll.u32 %s304_s23, 6  ;;  %s314_s9 = sadd.s32 %s1622_s27, %s1185_s24 }
  0x49   : > { %s1135_s10 = sshll.u32 %s314_s9, 6  ;;  %s308_s13 = scalar_lea.vmem [#allocation4], %s1132_s7 }
  0x4a   : > { %s317_s5 = sshll.u32 %s308_s13, 4  ;;  %s2094_s1 = sld [smem:[#allocation19_spill]]  ;;  %s1844_s5 = int_to_ptr.vmem [resolvable:$true] %s317_s5 }
  0x4b   : > { %s1846_s11 = scalar_lea.sflag [#allocation5], %s304_s23 }
  0x50   : > { %s1842_s28 = scalar_lea.hbm %s2094_s1, %s1135_s10  ;;  %s1452_s9 = scalar_lea.hbm %s2094_s1, 4096 }
  0x51   : > { %s1448_s12 = scalar_lea.hbm %s1842_s28, 1024  ;;  %p1453_p11 = scmp.lt.u32.totalorder %s1842_s28, %s2094_s1 }
  0x52   : > { %p1449_p4 = scmp.ne.s32.totalorder %s1842_s28, %s1448_s12  ;;  %p1454_p13 = scmp.lt.u32.totalorder %s1452_s9, %s1448_s12 }
  0x53   : > { %p1456_p1 = scmp.lt.u32.totalorder %s1448_s12, %s1842_s28 }
  0x54   : > { %p1450_p9 = pnand %p1449_p4, %p1767_p6  ;;  %p1455_p0 = por %p1454_p13, %p1453_p11 }
  0x56   : > { %p1451_p10 = pneg %p1450_p9  ;;  %p1457_p2 = por %p1456_p1, %p1455_p0 }
  0x58   : > { %p1458_p3 = pnand %p1457_p2, %p1451_p10 }
  0x5a   : > { %1461 = shalt.err (!%p1458_p3)
}
  0x5b   : > { %s1462_s23 = scalar_lea.vmem %s1844_s5, 1024  ;;  %s1632_s10 = smov [#allocation4]  }
  0x5c   : > { %p1463_p8 = scmp.ne.s32.totalorder %s1844_s5, %s1462_s23  ;;  %s1466_s13 = sshll.u32 %s1632_s10, 4  ;;  %s1467_s13 = int_to_ptr.vmem [resolvable:$false] %s1466_s13 }
  0x5d   : > { %s1468_s24 = scalar_lea.vmem %s1467_s13, 2048  ;;  %p1469_p7 = scmp.lt.s32.totalorder %s1844_s5, %s1467_s13 }
  0x5e   : > { %p1464_p4 = pnand %p1463_p8, %p1767_p6  ;;  %p1470_p5 = scmp.lt.s32.totalorder %s1468_s24, %s1462_s23 }
  0x60   : > { %p1465_p9 = pneg %p1464_p4  ;;  %p1471_p11 = por %p1470_p5, %p1469_p7 }
  0x62   : > { %p1472_p13 = pnand %p1471_p11, %p1465_p9 }
  0x64   : > { %1475 = shalt.err (!%p1472_p13)
}
  0x65   : > { %s1633_s12 = smov 128   ;;  %s1634_s7 = smov 64  }
  0x66   : > { %s1635_s9 = smov 4  }
  0x67   : > { %1296 = dma.hbm_to_vmem [thread:$0]  (%p1767_p6), %s1842_s28, 1024, %s1844_s5, %s1846_s11, %s1633_s12, %s1634_s7, %s1635_s9  }
  0x68 PF: > { %p1136_p10 = scmp.ge.s32.totalorder %s1630_s29, 1  ;;  %p341_p0 = scmp.lt.s32.totalorder %s1630_s29, 9 }
  0x6a   : > { %p342_p1 = pnand %p1136_p10, %p341_p0 }
  0x6b   : > { %s348_s0 = sand.u32 (!%p342_p1), 1, %s1598_s21   ;;  %s354_s8 = sand.u32 (!%p342_p1), 1, %s1590_s19  }
  0x6c   : > { %345 = sbr.rel (%p342_p1) target bundleno = 639 (0x27f), region = 73  ;;  %s1137_s23 = sshll.u32 (!%p342_p1), %s348_s0, 6 }
  0x6d   : > { %s1138_s10 = sshll.u32 (!%p342_p1), %s354_s8, 6  ;;  %s1874_s13 = scalar_lea.vmem (!%p342_p1), [#allocation3], %s1137_s23 }
  0x6e   : > { %s355_s24 = scalar_lea.sflag (!%p342_p1), [#allocation5], %s354_s8  ;;  %s1876_s1 = scalar_lea.vmem (!%p342_p1), [#allocation4], %s1138_s10 }
  0x73   : > { %1565 = dma.done.wait (%p1782_p12), %s355_s24, 1024  }
  0x74   : > { %1567 = vsyncadd (%p1782_p12), %s355_s24, 4294966272  ;;  %s2095_s28 = sld [smem:[#allocation11_spill]]  ;;  %s393_s14 = sand.u32 1, %s1578_s16  }
  0x75   : > { %s1140_s21 = sshll.u32 %s1614_s25, 4  ;;  %s1139_s5 = sshll.u32 %s393_s14, 7 }
  0x76   : > { %p399_p6 = scmp.lt.s32.totalorder %s1140_s21, 31  ;;  %s2096_s9 = sld [smem:[#allocation20_spill]] }
  0x77   : > { %s2097_s10 = sld [smem:[#allocation21_spill]]  ;;  %s1898_s27 = scalar_lea.vmem [#allocation7], %s1139_s5 }
  0x78   : > { %s2130_s21 = smov (!%p399_p6, %s1140_s21), 31  ;;  %s2098_s26 = sld [smem:[#allocation10_spill]] }
  0x79   : > { %s1141_s11 = sshll.u32 %s2130_s21, 3 }
  0x7a   : > { %p404_p5 = scmp.lt.s32.totalorder %s2095_s28, 1 }
  0x7c   : > { %s2132_s28 = smov (!%p404_p5, %s2095_s28), 1  ;;  %s1891_s0 = scalar_lea.vmem %s2096_s9, %s1141_s11 }
  0x7d   : > { %s1142_s3 = sshll.u32 %s2132_s28, 2 }
  0x7e   : > { %s1896_s24 = scalar_lea.vmem %s2097_s10, %s1142_s3  ;;  %p1143_p12 = scmp.ne.s32.totalorder %s2098_s26, 0 }
  0x7f   : > { %v1636_v16 = vmov (!%p1143_p12), 0.0  }
  0x80   : > { %413 = sbr.rel (%p1143_p12) target bundleno = 136 (0x88), region = 85  ;;  %414 = vst [vmem:[#allocation2] sm:$0xff] (!%p1143_p12), %v1636_v16  ;;  %415 = vst [vmem:[#allocation2 + $0x8] sm:$0xff] (!%p1143_p12), %v1636_v16 }
  0x81   : > { %416 = vst [vmem:[#allocation2 + $0x10] sm:$0xff] (!%p1143_p12), %v1636_v16  ;;  %417 = vst [vmem:[#allocation2 + $0x18] sm:$0xff] (!%p1143_p12), %v1636_v16 }
  0x82   : > { %418 = vst [vmem:[#allocation2 + $0x20] sm:$0xff] (!%p1143_p12), %v1636_v16  ;;  %419 = vst [vmem:[#allocation2 + $0x28] sm:$0xff] (!%p1143_p12), %v1636_v16 }
  0x83   : > { %420 = vst [vmem:[#allocation2 + $0x30] sm:$0xff] (!%p1143_p12), %v1636_v16  ;;  %421 = vst [vmem:[#allocation2 + $0x38] sm:$0xff] (!%p1143_p12), %v1636_v16 }
  0x84   : > { %422 = vst [vmem:[#allocation2 + $0x40] sm:$0xff] (!%p1143_p12), %v1636_v16  ;;  %423 = vst [vmem:[#allocation2 + $0x48] sm:$0xff] (!%p1143_p12), %v1636_v16 }
  0x85   : > { %424 = vst [vmem:[#allocation2 + $0x50] sm:$0xff] (!%p1143_p12), %v1636_v16  ;;  %425 = vst [vmem:[#allocation2 + $0x58] sm:$0xff] (!%p1143_p12), %v1636_v16 }
  0x86   : > { %426 = vst [vmem:[#allocation2 + $0x60] sm:$0xff] (!%p1143_p12), %v1636_v16  ;;  %427 = vst [vmem:[#allocation2 + $0x68] sm:$0xff] (!%p1143_p12), %v1636_v16 }
  0x87   : > { %428 = vst [vmem:[#allocation2 + $0x70] sm:$0xff] %v1636_v16  ;;  %429 = vst [vmem:[#allocation2 + $0x78] sm:$0xff] %v1636_v16 }
  0x88 PF: > { %v1432_v17 = vld [vmem:[%s1876_s1] sm:$0xff]   ;;  %v1433_v18 = vld [vmem:[%s1876_s1 + $0x8] sm:$0xff]   ;;  %v1434_v19 = vld [vmem:[%s1876_s1 + $0x10] sm:$0xff]  }
  0x89   : > { %1220 = vmatprep.subr.bf16.mxu0 %v1432_v17  ;;  %1278 = vmatprep.subr.bf16.mxu1 %v1432_v17  ;;  %v1435_v20 = vld [vmem:[%s1876_s1 + $0x18] sm:$0xff]   ;;  %v1440_v21 = vld [vmem:[%s1874_s13] sm:$0xff]   ;;  %v1437_v24 = vld [vmem:[%s1876_s1 + $0x28] sm:$0xff]  }
  0x8a   : > { %1221 = vmatpush3.bf16.msra.mxu0 %v1432_v17  ;;  %1286 = vmatpush3.bf16.msra.mxu1 %v1432_v17  ;;  %v1441_v22 = vld [vmem:[%s1874_s13 + $0x20] sm:$0xff]   ;;  %v1438_v25 = vld [vmem:[%s1876_s1 + $0x30] sm:$0xff]   ;;  %v1439_v26 = vld [vmem:[%s1876_s1 + $0x38] sm:$0xff]  }
  0x8b   : > { %1222 = vmatprep.subr.bf16.mxu0 %v1433_v18  ;;  %1279 = vmatprep.subr.bf16.mxu1 %v1433_v18  ;;  %v1436_v23 = vld [vmem:[%s1876_s1 + $0x20] sm:$0xff]   ;;  %v1442_v27 = vld [vmem:[%s1874_s13 + $0x8] sm:$0xff]   ;;  %v1444_v29 = vld [vmem:[%s1874_s13 + $0x10] sm:$0xff]   ;;  %s2099_s1 = sld [smem:[#allocation10_spill]] }
  0x8c   : > { %1236 = vmatprep.mubr.bf16.mxu0 %v1440_v21  ;;  %1244 = vmatprep.mubr.bf16.mxu1 %v1441_v22  ;;  %v1443_v28 = vld [vmem:[%s1874_s13 + $0x28] sm:$0xff]   ;;  %v1445_v30 = vld [vmem:[%s1874_s13 + $0x30] sm:$0xff]   ;;  %v1446_v31 = vld [vmem:[%s1874_s13 + $0x18] sm:$0xff]  }
  0x8d   : > { %v1447_v32 = vld [vmem:[%s1874_s13 + $0x38] sm:$0xff]   ;;  %v432_v33 = vld [vmem:[#allocation2 + $0x10] sm:$0xff]  ;;  %v430_v35 = vld [vmem:[#allocation2] sm:$0xff] }
  0x8e   : > { %1223 = vmatpush3.bf16.msra.mxu0 %v1433_v18  ;;  %1287 = vmatpush3.bf16.msra.mxu1 %v1433_v18  ;;  %v440_v34 = vld [vmem:[#allocation2 + $0x50] sm:$0xff]  ;;  %v438_v36 = vld [vmem:[#allocation2 + $0x40] sm:$0xff]  ;;  %v433_v39 = vld [vmem:[#allocation2 + $0x18] sm:$0xff] }
  0x8f   : > { %1224 = vmatprep.subr.bf16.mxu0 %v1434_v19  ;;  %1280 = vmatprep.subr.bf16.mxu1 %v1434_v19  ;;  %v441_v40 = vld [vmem:[#allocation2 + $0x58] sm:$0xff]  ;;  %v431_v45 = vld [vmem:[#allocation2 + $0x8] sm:$0xff]  ;;  %v436_v57 = vld [vmem:[#allocation2 + $0x30] sm:$0xff] }
  0x90   : > { %v439_v46 = vld [vmem:[#allocation2 + $0x48] sm:$0xff]  ;;  %v444_v58 = vld [vmem:[#allocation2 + $0x70] sm:$0xff]  ;;  %v434_v59 = vld [vmem:[#allocation2 + $0x20] sm:$0xff] }
  0x91   : > { %v442_v60 = vld [vmem:[#allocation2 + $0x60] sm:$0xff]  ;;  %v437_v63 = vld [vmem:[#allocation2 + $0x38] sm:$0xff]  ;;  %v435_v5 = vld [vmem:[#allocation2 + $0x28] sm:$0xff]  ;;  %p1160_p7 = scmp.ne.s32.totalorder %s2099_s1, 1 }
  0x92   : > { %1225 = vmatpush3.bf16.msra.mxu0 %v1434_v19  ;;  %1288 = vmatpush3.bf16.msra.mxu1 %v1434_v19  ;;  %v445_v0 = vld [vmem:[#allocation2 + $0x78] sm:$0xff]  ;;  %v443_v6 = vld [vmem:[#allocation2 + $0x68] sm:$0xff]  ;;  %v723_v17 = vld [vmem:[%s1896_s24] sm:$0xf] (!%p1160_p7)  ;;  %vm773_vm0 = vcmask (!%p1160_p7), 1043456   ;;  %vm724_vm1 = vcmask (!%p1160_p7), 31744  }
  0x93   : > { %1226 = vmatprep.subr.bf16.mxu0 %v1435_v20  ;;  %1281 = vmatprep.subr.bf16.mxu1 %v1435_v20  ;;  %v707_v18 = vld [vmem:[%s1891_s0] sm:$0xff] (!%p1160_p7)  ;;  %v716_v21 = vld [vmem:[%s1891_s0 + $0x48] sm:$0xff] (!%p1160_p7)  ;;  %v709_v22 = vld [vmem:[%s1891_s0 + $0x10] sm:$0xff] (!%p1160_p7) }
  0x94   : > { %v715_v19 = vld [vmem:[%s1891_s0 + $0x40] sm:$0xff] (!%p1160_p7) }
  0x96   : > { %1227 = vmatpush3.bf16.msra.mxu0 %v1435_v20  ;;  %1289 = vmatpush3.bf16.msra.mxu1 %v1435_v20  ;;  %v708_v20 = vld [vmem:[%s1891_s0 + $0x8] sm:$0xff] (!%p1160_p7) }
  0x97   : > { %1228 = vmatprep.subr.bf16.mxu0 %v1436_v23  ;;  %1282 = vmatprep.subr.bf16.mxu1 %v1436_v23 }
  0x9a   : > { %1229 = vmatpush3.bf16.msra.mxu0 %v1436_v23  ;;  %1290 = vmatpush3.bf16.msra.mxu1 %v1436_v23  ;;  %v717_v23 = vld [vmem:[%s1891_s0 + $0x50] sm:$0xff] (!%p1160_p7) }
  0x9b   : > { %1230 = vmatprep.subr.bf16.mxu0 %v1437_v24  ;;  %1283 = vmatprep.subr.bf16.mxu1 %v1437_v24 }
  0x9e   : > { %1231 = vmatpush3.bf16.msra.mxu0 %v1437_v24  ;;  %1291 = vmatpush3.bf16.msra.mxu1 %v1437_v24  ;;  %v710_v24 = vld [vmem:[%s1891_s0 + $0x18] sm:$0xff] (!%p1160_p7) }
  0x9f   : > { %1232 = vmatprep.subr.bf16.mxu0 %v1438_v25  ;;  %1284 = vmatprep.subr.bf16.mxu1 %v1438_v25 }
  0xa2   : > { %1233 = vmatpush3.bf16.msra.mxu0 %v1438_v25  ;;  %1292 = vmatpush3.bf16.msra.mxu1 %v1438_v25  ;;  %v718_v25 = vld [vmem:[%s1891_s0 + $0x58] sm:$0xff] (!%p1160_p7) }
  0xa3   : > { %1234 = vmatprep.subr.bf16.mxu0 %v1439_v26  ;;  %1285 = vmatprep.subr.bf16.mxu1 %v1439_v26 }
  0xa6   : > { %1235 = vmatpush3.bf16.msra.mxu0 %v1439_v26  ;;  %1293 = vmatpush3.bf16.msra.mxu1 %v1439_v26  ;;  %v711_v26 = vld [vmem:[%s1891_s0 + $0x20] sm:$0xff] (!%p1160_p7) }
  0xa7   : > { %1252 = vmatprep.subr.msk.mxu0 (!%p1160_p7), %vm773_vm0, %v723_v17  ;;  %1294 = vmatprep.subr.msk.mxu1 (!%p1160_p7), %vm773_vm0, %v723_v17 }
  0xa9   : > { %1237 = vmatmul.mubr.bf16.vlgmr.msra.gmra.mrb[0].mxu0 %v1442_v27  ;;  %1245 = vmatmul.mubr.bf16.vlgmr.msra.gmra.mrb[0].mxu1 %v1443_v28  ;;  %v719_v27 = vld [vmem:[%s1891_s0 + $0x60] sm:$0xff] (!%p1160_p7)  ;;  %v712_v28 = vld [vmem:[%s1891_s0 + $0x28] sm:$0xff] (!%p1160_p7) }
  0xaa   : > { %1240 = vmatprep.mubr.bf16.mxu0 %v1444_v29  ;;  %1248 = vmatprep.mubr.bf16.mxu1 %v1445_v30  ;;  %v720_v29 = vld [vmem:[%s1891_s0 + $0x68] sm:$0xff] (!%p1160_p7)  ;;  %v713_v30 = vld [vmem:[%s1891_s0 + $0x30] sm:$0xff] (!%p1160_p7) }
  0xab   : > { %1253 = vmatpush3.msk.msra.mxu0 (!%p1160_p7), %vm773_vm0, %v723_v17  ;;  %1295 = vmatpush3.msk.msra.mxu1 (!%p1160_p7), %vm773_vm0, %v723_v17 }
  0xb1   : > { %1241 = vmatmul.mubr.bf16.gmra.mrb[4].mxu0 %v1446_v31  ;;  %1249 = vmatmul.mubr.bf16.gmra.mrb[4].mxu1 %v1447_v32  ;;  %v721_v31 = vld [vmem:[%s1891_s0 + $0x70] sm:$0xff] (!%p1160_p7)  ;;  %v714_v32 = vld [vmem:[%s1891_s0 + $0x38] sm:$0xff] (!%p1160_p7) }
  0xb2   : > { %1254 = vmatprep.mubr.msk.f32.mxu0 (!%p1160_p7), %vm724_vm1, %v707_v18  ;;  %1266 = vmatprep.mubr.msk.f32.mxu1 (!%p1160_p7), %vm724_vm1, %v715_v19 }
 0x17c   : > { %v1238_v37 = vpop.f32.mrb[0].mxu0  ;;  %v1246_v38 = vpop.f32.mrb[0].mxu1 }
 0x17d   : > { %v673_v41 = vadd.f32 %v1238_v37, %v432_v33  ;;  %v681_v42 = vadd.f32 %v1246_v38, %v440_v34  ;;  %v608_v43 = vpop.f32.mrb[1].mxu0  ;;  %v640_v44 = vpop.f32.mrb[1].mxu1  ;;  %1255 = vmatmul.mubr.msk.f32.vlgmr.msra.gmra.mrb[0].mxu0 (!%p1160_p7), %vm724_vm1, %v708_v20  ;;  %1267 = vmatmul.mubr.msk.f32.vlgmr.msra.gmra.mrb[0].mxu1 (!%p1160_p7), %vm724_vm1, %v716_v21  ;;  %v722_v33 = vld [vmem:[%s1891_s0 + $0x78] sm:$0xff] (!%p1160_p7) }
 0x17e   : > { %v671_v47 = vadd.f32 %v608_v43, %v430_v35  ;;  %v679_v48 = vadd.f32 %v640_v44, %v438_v36  ;;  %v1239_v49 = vpop.f32.mrb[2].mxu0  ;;  %v1247_v50 = vpop.f32.mrb[2].mxu1  ;;  %1257 = vmatprep.mubr.msk.f32.mxu0 (!%p1160_p7), %vm724_vm1, %v709_v22  ;;  %1269 = vmatprep.mubr.msk.f32.mxu1 (!%p1160_p7), %vm724_vm1, %v717_v23 }
 0x17f   : > { %689 = vst [vmem:[#allocation2 + $0x10] sm:$0xff] %v673_v41  ;;  %697 = vst [vmem:[#allocation2 + $0x50] sm:$0xff] %v681_v42  ;;  %v674_v51 = vadd.f32 %v1239_v49, %v433_v39  ;;  %v682_v52 = vadd.f32 %v1247_v50, %v441_v40  ;;  %v611_v53 = vpop.f32.mrb[3].mxu0  ;;  %v643_v54 = vpop.f32.mrb[3].mxu1 }
 0x180   : > { %687 = vst [vmem:[#allocation2] sm:$0xff] %v671_v47  ;;  %695 = vst [vmem:[#allocation2 + $0x40] sm:$0xff] %v679_v48  ;;  %v672_v55 = vadd.f32 %v611_v53, %v431_v45  ;;  %v680_v56 = vadd.f32 %v643_v54, %v439_v46 }
 0x181   : > { %690 = vst [vmem:[#allocation2 + $0x18] sm:$0xff] %v674_v51  ;;  %698 = vst [vmem:[#allocation2 + $0x58] sm:$0xff] %v682_v52  ;;  %1258 = vmatmul.mubr.msk.f32.gmra.mrb[2].mxu0 (!%p1160_p7), %vm724_vm1, %v710_v24  ;;  %1270 = vmatmul.mubr.msk.f32.gmra.mrb[2].mxu1 (!%p1160_p7), %vm724_vm1, %v718_v25 }
 0x182   : > { %688 = vst [vmem:[#allocation2 + $0x8] sm:$0xff] %v672_v55  ;;  %696 = vst [vmem:[#allocation2 + $0x48] sm:$0xff] %v680_v56  ;;  %1260 = vmatprep.mubr.msk.f32.mxu0 (!%p1160_p7), %vm724_vm1, %v711_v26  ;;  %1272 = vmatprep.mubr.msk.f32.mxu1 (!%p1160_p7), %vm724_vm1, %v719_v27 }
 0x184   : > { %v1242_v61 = vpop.f32.mrb[4].mxu0  ;;  %v1250_v62 = vpop.f32.mrb[4].mxu1  ;;  %706 = sbr.rel (%p1160_p7) target bundleno = 609 (0x261), region = 89 }
 0x185   : > { %v677_v1 = vadd.f32 %v1242_v61, %v436_v57  ;;  %v685_v2 = vadd.f32 %v1250_v62, %v444_v58  ;;  %v624_v3 = vpop.f32.mrb[5].mxu0  ;;  %v656_v4 = vpop.f32.mrb[5].mxu1  ;;  %1261 = vmatmul.mubr.msk.f32.gmra.mrb[4].mxu0 (!%p1160_p7), %vm724_vm1, %v712_v28  ;;  %1273 = vmatmul.mubr.msk.f32.gmra.mrb[4].mxu1 (!%p1160_p7), %vm724_vm1, %v720_v29 }
 0x186   : > { %v675_v7 = vadd.f32 %v624_v3, %v434_v59  ;;  %v683_v8 = vadd.f32 %v656_v4, %v442_v60  ;;  %v1243_v9 = vpop.f32.mrb[6].mxu0  ;;  %v1251_v10 = vpop.f32.mrb[6].mxu1  ;;  %1263 = vmatprep.mubr.msk.f32.mxu0 (!%p1160_p7), %vm724_vm1, %v713_v30  ;;  %1275 = vmatprep.mubr.msk.f32.mxu1 (!%p1160_p7), %vm724_vm1, %v721_v31  ;;  %v924_v48 = vld [vmem:[#allocation2 + $0x10] sm:$0xff] (!%p1160_p7) }
 0x187   : > { %693 = vst [vmem:[#allocation2 + $0x30] sm:$0xff] %v677_v1  ;;  %701 = vst [vmem:[#allocation2 + $0x70] sm:$0xff] %v685_v2  ;;  %v678_v11 = vadd.f32 %v1243_v9, %v437_v63  ;;  %v686_v12 = vadd.f32 %v1251_v10, %v445_v0  ;;  %v627_v13 = vpop.f32.mrb[7].mxu0  ;;  %v659_v14 = vpop.f32.mrb[7].mxu1  ;;  %v922_v36 = vld [vmem:[#allocation2] sm:$0xff] (!%p1160_p7)  ;;  %v932_v49 = vld [vmem:[#allocation2 + $0x50] sm:$0xff] (!%p1160_p7) }
 0x188   : > { %691 = vst [vmem:[#allocation2 + $0x20] sm:$0xff] %v675_v7  ;;  %699 = vst [vmem:[#allocation2 + $0x60] sm:$0xff] %v683_v8  ;;  %v676_v15 = vadd.f32 %v627_v13, %v435_v5  ;;  %v684_v16 = vadd.f32 %v659_v14, %v443_v6  ;;  %v930_v37 = vld [vmem:[#allocation2 + $0x40] sm:$0xff] (!%p1160_p7)  ;;  %v925_v46 = vld [vmem:[#allocation2 + $0x18] sm:$0xff] (!%p1160_p7) }
 0x189   : > { %694 = vst [vmem:[#allocation2 + $0x38] sm:$0xff] %v678_v11  ;;  %702 = vst [vmem:[#allocation2 + $0x78] sm:$0xff] %v686_v12  ;;  %1264 = vmatmul.mubr.msk.f32.gmra.mrb[6].mxu0 (!%p1160_p7), %vm724_vm1, %v714_v32  ;;  %1276 = vmatmul.mubr.msk.f32.gmra.mrb[6].mxu1 (!%p1160_p7), %vm724_vm1, %v722_v33  ;;  %v923_v34 = vld [vmem:[#allocation2 + $0x8] sm:$0xff] (!%p1160_p7)  ;;  %v933_v47 = vld [vmem:[#allocation2 + $0x58] sm:$0xff] (!%p1160_p7) }
 0x18a   : > { %692 = vst [vmem:[#allocation2 + $0x28] sm:$0xff] %v676_v15  ;;  %700 = vst [vmem:[#allocation2 + $0x68] sm:$0xff] %v684_v16  ;;  %v931_v35 = vld [vmem:[#allocation2 + $0x48] sm:$0xff] (!%p1160_p7) }
 0x18e   : > { %v928_v8 = vld [vmem:[#allocation2 + $0x30] sm:$0xff] }
 0x18f   : > { %v926_v60 = vld [vmem:[#allocation2 + $0x20] sm:$0xff]  ;;  %v936_v9 = vld [vmem:[#allocation2 + $0x70] sm:$0xff] }
 0x190   : > { %v934_v61 = vld [vmem:[#allocation2 + $0x60] sm:$0xff]  ;;  %v929_v6 = vld [vmem:[#allocation2 + $0x38] sm:$0xff] }
 0x191   : > { %v927_v58 = vld [vmem:[#allocation2 + $0x28] sm:$0xff]  ;;  %v937_v7 = vld [vmem:[#allocation2 + $0x78] sm:$0xff] }
 0x192   : > { %v935_v59 = vld [vmem:[#allocation2 + $0x68] sm:$0xff] }
 0x250   : > { %v1256_v38 = vpop.f32.mrb[0].mxu0  ;;  %v1268_v39 = vpop.f32.mrb[0].mxu1 }
 0x251   : > { %v939_v40 = vadd.f32 %v1256_v38, %v923_v34  ;;  %v947_v41 = vadd.f32 %v1268_v39, %v931_v35  ;;  %v843_v42 = vpop.f32.mrb[1].mxu0  ;;  %v883_v43 = vpop.f32.mrb[1].mxu1 }
 0x252   : > { %v938_v44 = vadd.f32 %v922_v36, %v843_v42  ;;  %v946_v45 = vadd.f32 %v930_v37, %v883_v43 }
 0x253   : > { %955 = vst [vmem:[%s1898_s27 + $0x8] sm:$0xff] %v939_v40  ;;  %963 = vst [vmem:[%s1898_s27 + $0x48] sm:$0xff] %v947_v41 }
 0x254   : > { %954 = vst [vmem:[%s1898_s27] sm:$0xff] %v938_v44  ;;  %962 = vst [vmem:[%s1898_s27 + $0x40] sm:$0xff] %v946_v45  ;;  %v1259_v50 = vpop.f32.mrb[2].mxu0  ;;  %v1271_v51 = vpop.f32.mrb[2].mxu1 }
 0x255   : > { %v941_v52 = vadd.f32 %v1259_v50, %v925_v46  ;;  %v949_v53 = vadd.f32 %v1271_v51, %v933_v47  ;;  %v853_v54 = vpop.f32.mrb[3].mxu0  ;;  %v893_v55 = vpop.f32.mrb[3].mxu1 }
 0x256   : > { %v940_v56 = vadd.f32 %v924_v48, %v853_v54  ;;  %v948_v57 = vadd.f32 %v932_v49, %v893_v55 }
 0x257   : > { %957 = vst [vmem:[%s1898_s27 + $0x18] sm:$0xff] %v941_v52  ;;  %965 = vst [vmem:[%s1898_s27 + $0x58] sm:$0xff] %v949_v53 }
 0x258   : > { %956 = vst [vmem:[%s1898_s27 + $0x10] sm:$0xff] %v940_v56  ;;  %964 = vst [vmem:[%s1898_s27 + $0x50] sm:$0xff] %v948_v57  ;;  %v1262_v62 = vpop.f32.mrb[4].mxu0  ;;  %v1274_v63 = vpop.f32.mrb[4].mxu1 }
 0x259   : > { %v943_v0 = vadd.f32 %v1262_v62, %v927_v58  ;;  %v951_v1 = vadd.f32 %v1274_v63, %v935_v59  ;;  %v863_v2 = vpop.f32.mrb[5].mxu0  ;;  %v903_v3 = vpop.f32.mrb[5].mxu1 }
 0x25a   : > { %v942_v4 = vadd.f32 %v926_v60, %v863_v2  ;;  %v950_v5 = vadd.f32 %v934_v61, %v903_v3 }
 0x25b   : > { %959 = vst [vmem:[%s1898_s27 + $0x28] sm:$0xff] %v943_v0  ;;  %967 = vst [vmem:[%s1898_s27 + $0x68] sm:$0xff] %v951_v1 }
 0x25c   : > { %958 = vst [vmem:[%s1898_s27 + $0x20] sm:$0xff] %v942_v4  ;;  %966 = vst [vmem:[%s1898_s27 + $0x60] sm:$0xff] %v950_v5  ;;  %v1265_v10 = vpop.f32.mrb[6].mxu0  ;;  %v1277_v11 = vpop.f32.mrb[6].mxu1 }
 0x25d   : > { %v945_v12 = vadd.f32 %v1265_v10, %v929_v6  ;;  %v953_v13 = vadd.f32 %v1277_v11, %v937_v7  ;;  %v873_v14 = vpop.f32.mrb[7].mxu0  ;;  %v913_v15 = vpop.f32.mrb[7].mxu1 }
 0x25e   : > { %v944_v16 = vadd.f32 %v928_v8, %v873_v14  ;;  %v952_v17 = vadd.f32 %v936_v9, %v913_v15 }
 0x25f   : > { %961 = vst [vmem:[%s1898_s27 + $0x38] sm:$0xff] %v945_v12  ;;  %969 = vst [vmem:[%s1898_s27 + $0x78] sm:$0xff] %v953_v13 }
 0x260   : > { %960 = vst [vmem:[%s1898_s27 + $0x30] sm:$0xff] %v944_v16  ;;  %968 = vst [vmem:[%s1898_s27 + $0x70] sm:$0xff] %v952_v17 }
 0x261 PF: > { %s2100_s26 = sld [smem:[#allocation11_spill]]  ;;  %s1186_s13 = sshll.u32 %s1614_s25, 5 }
 0x262   : > { %s986_s21 = sshll.u32 %s1898_s27, 4  ;;  %s2101_s7 = sld [smem:[#allocation22_spill]]  ;;  %s1970_s21 = int_to_ptr.vmem [resolvable:$true] %s986_s21 }
 0x263   : > { %s1979_s0 = scalar_lea.sflag [#allocation6], %s393_s14  ;;  %s1476_s3 = scalar_lea.vmem %s1970_s21, 2048 }
 0x264   : > { %p1477_p2 = scmp.ne.s32.totalorder %s1970_s21, %s1476_s3  ;;  %p2102_p3 = scmp.ne.s32.totalorder %s2091_s6, 0 }
 0x265   : > { %s1637_s25 = smov [#allocation7]  }
 0x266   : > { %p1478_p8 = pnand %p1477_p2, %p2102_p3  ;;  %s1480_s27 = sshll.u32 %s1637_s25, 4  ;;  %s1481_s27 = int_to_ptr.vmem [resolvable:$false] %s1480_s27 }
 0x267   : > { %s983_s28 = sadd.s32 %s2100_s26, %s1186_s13  ;;  %s1482_s8 = scalar_lea.vmem %s1481_s27, 4096 }
 0x268   : > { %s1181_s5 = sshll.u32 %s983_s28, 7  ;;  %p1479_p4 = pneg %p1478_p8 }
 0x269   : > { %s1975_s9 = scalar_lea.hbm %s2101_s7, %s1181_s5  ;;  %p1483_p9 = scmp.lt.s32.totalorder %s1970_s21, %s1481_s27 }
 0x26a   : > { %p1484_p11 = scmp.lt.s32.totalorder %s1482_s8, %s1476_s3 }
 0x26c   : > { %p1485_p13 = por %p1484_p11, %p1483_p9 }
 0x26e   : > { %p1486_p10 = pnand %p1485_p13, %p1479_p4 }
 0x270   : > { %1489 = shalt.err (!%p1486_p10)
}
 0x271   : > { %s1490_s14 = scalar_lea.hbm %s1975_s9, 2048  ;;  %s1494_s24 = scalar_lea.hbm %s2101_s7, 8192 }
 0x272   : > { %p1491_p0 = scmp.ne.s32.totalorder %s1975_s9, %s1490_s14  ;;  %p1495_p5 = scmp.lt.u32.totalorder %s1975_s9, %s2101_s7 }
 0x273   : > { %p1496_p12 = scmp.lt.u32.totalorder %s1494_s24, %s1490_s14  ;;  %p1498_p2 = scmp.lt.u32.totalorder %s1490_s14, %s1975_s9 }
 0x274   : > { %p1492_p1 = pnand %p1491_p0, %p2102_p3 }
 0x275   : > { %p1497_p7 = por %p1496_p12, %p1495_p5 }
 0x276   : > { %p1493_p6 = pneg %p1492_p1 }
 0x277   : > { %p1499_p8 = por %p1498_p2, %p1497_p7 }
 0x279   : > { %p1500_p4 = pnand %p1499_p8, %p1493_p6 }
 0x27b   : > { %1503 = shalt.err (!%p1500_p4)
}
 0x27c   : > { %s1638_s13 = smov 128   ;;  %s1639_s28 = smov 256  }
 0x27d   : > { %s1640_s5 = smov 8  }
 0x27e   : > { %1298 = dma.vmem_to_hbm [thread:$0]  (%p2102_p3), %s1970_s21, 2048, %s1975_s9, %s1979_s0, %s1638_s13, %s1639_s28, %s1640_s5  }
 0x27f PF: > { %p1304_p9 = scmp.ge.s32.totalorder %s1630_s29, 2  ;;  %s1001_s11 = sand.u32 1, %s1574_s15  }
 0x280   : > { %p2103_p11 = scmp.ne.s32.totalorder %s2092_s4, 0  ;;  %s1002_s12 = scalar_lea.sflag [#allocation6], %s1001_s11 }
 0x282   : > { %p1301_p13 = pnand %p1304_p9, %p2103_p11 }
 0x284   : > { %1569 = dma.done.wait (!%p1301_p13), %s1002_s12, 2048  }
 0x285   : > { %1571 = vsyncadd (!%p1301_p13), %s1002_s12, 4294965248  ;;  %s20_s29 = sadd.s32 1, %s1630_s29   ;;  %s2105_s23 = sld [smem:[#allocation12_spill]] }
 0x286   : > { %p2008_p10 = scmp.ge.s32.totalorder %s20_s29, 10   ;;  %s2106_s24 = sld [smem:[#allocation13_spill]] }
 0x287   : > { %s2107_s25 = sld [smem:[#allocation14_spill]]  ;;  %s2108_s26 = sld [smem:[#allocation15_spill]] }
 0x288   : > { %s2109_s27 = sld [smem:[#allocation16_spill]]  ;;  %s2110_s28 = sld [smem:[#allocation17_spill]] }
 0x289   : > { %s2111_s15 = smov %s1578_s16  ;;  %s2112_s16 = smov %s1582_s17 }
 0x28a   : > { %s2113_s17 = smov %s1791_s18  ;;  %s2114_s18 = smov %s1590_s19 }
 0x28b   : > { %s2115_s19 = smov %s1594_s20  ;;  %s2116_s20 = smov %s1776_s30 }
 0x28c   : > { %s2117_s21 = smov %s1602_s22  ;;  %s2118_s22 = smov %s1788_s2 }
 0x28d   :  { %19 = sbr.rel (!%p2008_p10) target bundleno = 17 (0x11), region = 144 }
 0x294   :  { %1007 = vsyncpa [#allocation5], 1 }
 0x295   :  { %1009 = vsyncpa [#allocation5 + $0x1], 1 }
 0x296   :  { %1010 = vsyncpa [#allocation6], 1 }
 0x297   :  { %1012 = vsyncpa [#allocation6 + $0x1], 1 }

</bundles_post_ra>
